<compile_context>
chip_gen: v5e
topology: v5e:2x2
jax: 0.10.0
libtpu: 0.0.40
codegen_flags: <defaults>
</compile_context>

<pallas_src>
import math

import jax
import jax.numpy as jnp
from jax.experimental import pallas as pl
from jax.experimental.pallas import tpu as pltpu


def _round_up(x, m):
    return ((x + m - 1) // m) * m


def _geo_resnet_kernel(h0_hbm, a_hbm, w_ref, ze_ref, o_hbm,
                       a_vmem, hbuf, out_stage, sem):
    """Grid = (L, row_tiles).  A and the ping-pong h are resident in VMEM scratch."""
    l = pl.program_id(0)
    i = pl.program_id(1)
    n_layers = pl.num_programs(0)
    tm = out_stage.shape[0]

    # One-time loads at the very first grid step: adjacency + initial node features go
    # straight HBM -> resident VMEM (no pipelined full-array window, no VMEM->VMEM copy).
    @pl.when((l == 0) & (i == 0))
    def _():
        cp_a = pltpu.make_async_copy(a_hbm, a_vmem, sem.at[0])
        cp_h = pltpu.make_async_copy(h0_hbm, hbuf.at[0], sem.at[1])
        cp_a.start()
        cp_h.start()
        cp_a.wait()
        cp_h.wait()

    src = jax.lax.rem(l, 2)   # layer l reads hbuf[l % 2] ...
    dst = 1 - src             # ... and writes hbuf[(l + 1) % 2]
    row0 = pl.multiple_of(i * tm, tm)

    # Message passing + node transform for this row tile; all MXU operands are VMEM
    # resident bf16, accumulation and the epilogue are f32.
    #   msg = A[rows, :] @ h
    #   z   = ReLU(msg @ W_l + Z_e_l)   with Z_e_l = E_agg @ We_l + b_l hoisted to glue JAX
    msg = jnp.dot(a_vmem[pl.ds(row0, tm), :], hbuf[src],
                  preferred_element_type=jnp.float32)
    z = jnp.dot(msg.astype(jnp.bfloat16), w_ref[0],
                preferred_element_type=jnp.float32)
    z = jnp.maximum(z + ze_ref[0], 0.0)

    # Residual update (f32), stored back into the bf16 resident ping-pong buffer.
    h_new = hbuf[src, pl.ds(row0, tm), :].astype(jnp.float32) + z
    hbuf[dst, pl.ds(row0, tm), :] = h_new.astype(jnp.bfloat16)

    # Only the LAST layer writes the result to HBM (manual DMA from an f32 staging tile),
    # saving (L-1)/L of the output HBM traffic vs a revisited blocked out_spec.
    @pl.when(l == n_layers - 1)
    def _():
        out_stage[...] = h_new
        cp_o = pltpu.make_async_copy(out_stage, o_hbm.at[i], sem.at[2])
        cp_o.start()
        cp_o.wait()


def geo_resnet_forward(h, edge_index, edge_weight, edge_attr, params, tm=256):
    """GeoResNet.forward: h = h + interaction_l(h, ...) for every layer, fused."""
    N, F = h.shape
    L = len(params)

    F_pad = _round_up(F, 128)                    # lane-dense feature dim
    N_pad = _round_up(N, math.lcm(tm, 128))      # node dim divisible by tm and 128
    n_row_tiles = N_pad // tm

    src_idx, dst_idx = edge_index[0], edge_index[1]

    # ---- glue (pure JAX): densify weighted adjacency, hoist the h-independent term ----
    a_dense = (jnp.zeros((N_pad, N_pad), jnp.float32)
               .at[dst_idx, src_idx].add(edge_weight)).astype(jnp.bfloat16)
    e_agg = jax.ops.segment_sum(edge_weight[:, None] * edge_attr, dst_idx,
                                num_segments=N_pad)                       # [N_pad, Fe]
    w_stack = jnp.stack([w for (w, _, _) in params])                      # [L, F, F]
    we_stack = jnp.stack([we for (_, we, _) in params])                   # [L, Fe, F]
    b_stack = jnp.stack([b for (_, _, b) in params])                      # [L, 1, F]
    z_e = jnp.einsum("ne,lef->lnf", e_agg, we_stack) + b_stack            # [L, N_pad, F]
    z_e = z_e.at[:, N:, :].set(0.0)        # keep padded rows exactly zero (bias broadcast)
    z_e = jnp.pad(z_e, ((0, 0), (0, 0), (0, F_pad - F)))

    h0 = (jnp.zeros((N_pad, F_pad), jnp.float32).at[:N, :F].set(h)).astype(jnp.bfloat16)
    w_pad = (jnp.zeros((L, F_pad, F_pad), jnp.float32)
             .at[:, :F, :F].set(w_stack)).astype(jnp.bfloat16)

    # VMEM budget: resident A (bf16) + bf16 ping-pong h + f32 staging tile
    # + double-buffered pipelined W / Z_e windows, plus slack.
    resident = N_pad * N_pad * 2 + 2 * N_pad * F_pad * 2 + tm * F_pad * 4
    pipelined = 2 * (F_pad * F_pad * 2) + 2 * (tm * F_pad * 4)
    vmem_needed = resident + pipelined + (2 << 20)
    assert vmem_needed <= (56 << 20), (
        f"graph too large for the resident-adjacency path ({vmem_needed / 2**20:.1f} MiB); "
        "TODO(synk): add a streamed / block-sparse adjacency fallback")
    vmem_limit = int(min(max(vmem_needed, 16 << 20), 56 << 20))

    out = pl.pallas_call(
        _geo_resnet_kernel,
        out_shape=jax.ShapeDtypeStruct((n_row_tiles, tm, F_pad), jnp.float32),
        grid_spec=pltpu.PrefetchScalarGridSpec(
            num_scalar_prefetch=0,
            grid=(L, n_row_tiles),
            in_specs=[
                pl.BlockSpec(memory_space=pl.ANY),                        # h0 (bf16, HBM)
                pl.BlockSpec(memory_space=pl.ANY),                        # A  (bf16, HBM)
                pl.BlockSpec((1, F_pad, F_pad), lambda l, i: (l, 0, 0)),  # W[l] (bf16)
                pl.BlockSpec((1, tm, F_pad), lambda l, i: (l, i, 0)),     # Z_e[l] row tile
            ],
            out_specs=pl.BlockSpec(memory_space=pl.ANY),                  # written via DMA
            scratch_shapes=[
                pltpu.VMEM((N_pad, N_pad), jnp.bfloat16),     # resident adjacency
                pltpu.VMEM((2, N_pad, F_pad), jnp.bfloat16),  # ping-pong resident h
                pltpu.VMEM((tm, F_pad), jnp.float32),         # f32 output staging tile
                pltpu.SemaphoreType.DMA((3,)),                # A load, h0 load, out store
            ],
        ),
        compiler_params=pltpu.CompilerParams(
            # Layer l+1 depends (through the private VMEM-resident hbuf) on every row
            # tile of layer l, so neither axis may be sharded across cores in this
            # fused formulation; keep both "arbitrary".
            dimension_semantics=("arbitrary", "arbitrary"),
            vmem_limit_bytes=vmem_limit,
        ),
    )(h0, a_dense, w_pad, z_e)

    return out.reshape(N_pad, F_pad)[:N, :F]


def geo_resnet_reference(h, edge_index, edge_weight, edge_attr, params):
    """Pure-JAX f32 reference with identical semantics."""
    N = h.shape[0]
    src_idx, dst_idx = edge_index[0], edge_index[1]
    a = jnp.zeros((N, N), jnp.float32).at[dst_idx, src_idx].add(edge_weight)
    e_agg = jax.ops.segment_sum(edge_weight[:, None] * edge_attr, dst_idx, num_segments=N)
    for (w, we, b) in params:
        z = jnp.maximum((a @ h) @ w + e_agg @ we + b, 0.0)
        h = h + z
    return h


def init_params(key, num_layers, F, Fe):
    params = []
    for _ in range(num_layers):
        k1, k2, key = jax.random.split(key, 3)
        w = jax.random.normal(k1, (F, F), dtype=jnp.float32) * (1.0 / jnp.sqrt(F))
        w_e = jax.random.normal(k2, (Fe, F), dtype=jnp.float32) * (1.0 / jnp.sqrt(Fe))
        b = jnp.zeros((1, F), dtype=jnp.float32)
        params.append((w, w_e, b))
    return params


if __name__ == "__main__":
    key = jax.random.PRNGKey(0)
    # nodes, feature dim, edge-attr dim, edges, layers (small but tile-exercising shapes)
    N, F, Fe, E, L = 200, 32, 8, 512, 3

    kh, ke, kw, ka, kp = jax.random.split(key, 5)
    h = jax.random.normal(kh, (N, F), dtype=jnp.float32)
    edge_index = jax.random.randint(ke, (2, E), 0, N, dtype=jnp.int32)
    edge_weight = jax.random.uniform(kw, (E,), dtype=jnp.float32)
    edge_attr = jax.random.normal(ka, (E, Fe), dtype=jnp.float32)
    params = init_params(kp, L, F, Fe)

    out = geo_resnet_forward(h, edge_index, edge_weight, edge_attr, params)
    out = jax.block_until_ready(out)
    assert out.shape == (N, F) and out.dtype == jnp.float32

    # Loose tolerance: MXU operands and the resident h buffer are bf16
    # (f32 accumulation / epilogue / residual add).
    ref = geo_resnet_reference(h, edge_index, edge_weight, edge_attr, params)
    max_err = float(jnp.max(jnp.abs(out - ref)))
    tol = 5e-2 * float(jnp.max(jnp.abs(ref))) + 1e-2
    assert max_err < tol, f"max abs error {max_err} exceeds tol {tol}"

    # TODO(synk): the original interaction Module is abstract (ModuleList of abstract
    # interactions); a concrete GCN-like interaction is used here.
    print("KERNEL_OK")
</pallas_src>

<mosaic_0001>
module attributes {stable_mosaic.version = 11 : i64} {
  func.func @_geo_resnet_kernel(%arg0: i32, %arg1: i32, %arg2: memref<256x128xbf16, #tpu.memory_space<any>>, %arg3: memref<256x256xbf16, #tpu.memory_space<any>>, %arg4: memref<1x128x128xbf16, #tpu.memory_space<vmem>>, %arg5: memref<1x256x128xf32, #tpu.memory_space<vmem>>, %arg6: memref<1x256x128xf32, #tpu.memory_space<any>>, %arg7: memref<256x256xbf16, #tpu.memory_space<vmem>>, %arg8: memref<2x256x128xbf16, #tpu.memory_space<vmem>>, %arg9: memref<256x128xf32, #tpu.memory_space<vmem>>, %arg10: memref<3x!tpu.dma_semaphore, #tpu.memory_space<semaphore_mem>>) attributes {dimension_semantics = [#tpu.dimension_semantics<arbitrary>, #tpu.dimension_semantics<arbitrary>], iteration_bounds = array<i64: 3, 1>, scalar_prefetch = 0 : i64, scratch_operands = 4 : i64, tpu.core_type = #tpu.core_type<tc>, window_params = [{}, {}, {transform_indices = @transform_2, window_bounds = array<i64: 1, 128, 128>}, {transform_indices = @transform_3, window_bounds = array<i64: 1, 256, 128>}, {}]} {
    %c0_i32 = arith.constant 0 : i32
    %0 = arith.cmpi eq, %arg0, %c0_i32 : i32
    %c0_i32_0 = arith.constant 0 : i32
    %1 = arith.cmpi eq, %arg1, %c0_i32_0 : i32
    %2 = arith.andi %0, %1 : i1
    %3 = arith.extui %2 : i1 to i32
    %c0_i32_1 = arith.constant 0 : i32
    %4 = arith.cmpi ne, %3, %c0_i32_1 : i32
    scf.if %4 {
      %c0_i32_16 = arith.constant 0 : i32
      %39 = tpu.memref_slice %arg10[%c0_i32_16] : memref<3x!tpu.dma_semaphore, #tpu.memory_space<semaphore_mem>> -> memref<1x!tpu.dma_semaphore, #tpu.memory_space<semaphore_mem>>
      %40 = tpu.memref_squeeze %39 : memref<1x!tpu.dma_semaphore, #tpu.memory_space<semaphore_mem>> -> memref<!tpu.dma_semaphore, #tpu.memory_space<semaphore_mem>>
      tpu.enqueue_dma source(%arg3 : memref<256x256xbf16, #tpu.memory_space<any>>) target(%arg7 : memref<256x256xbf16, #tpu.memory_space<vmem>>) target_semaphore(%40 : memref<!tpu.dma_semaphore, #tpu.memory_space<semaphore_mem>>)
      %c0_i32_17 = arith.constant 0 : i32
      %c1_i32_18 = arith.constant 1 : i32
      %c0_i32_19 = arith.constant 0 : i32
      %c0_i32_20 = arith.constant 0 : i32
      %41 = tpu.memref_slice %arg8[%c0_i32_17, %c0_i32_19, %c0_i32_20] : memref<2x256x128xbf16, #tpu.memory_space<vmem>> -> memref<1x256x128xbf16, #tpu.memory_space<vmem>>
      %42 = tpu.memref_squeeze %41 : memref<1x256x128xbf16, #tpu.memory_space<vmem>> -> memref<256x128xbf16, #tpu.memory_space<vmem>>
      %43 = tpu.memref_slice %arg10[%c1_i32_18] : memref<3x!tpu.dma_semaphore, #tpu.memory_space<semaphore_mem>> -> memref<1x!tpu.dma_semaphore, #tpu.memory_space<semaphore_mem>>
      %44 = tpu.memref_squeeze %43 : memref<1x!tpu.dma_semaphore, #tpu.memory_space<semaphore_mem>> -> memref<!tpu.dma_semaphore, #tpu.memory_space<semaphore_mem>>
      tpu.enqueue_dma source(%arg2 : memref<256x128xbf16, #tpu.memory_space<any>>) target(%42 : memref<256x128xbf16, #tpu.memory_space<vmem>>) target_semaphore(%44 : memref<!tpu.dma_semaphore, #tpu.memory_space<semaphore_mem>>)
      %c0_i32_21 = arith.constant 0 : i32
      %45 = tpu.memref_slice %arg10[%c0_i32_21] : memref<3x!tpu.dma_semaphore, #tpu.memory_space<semaphore_mem>> -> memref<1x!tpu.dma_semaphore, #tpu.memory_space<semaphore_mem>>
      %46 = tpu.memref_squeeze %45 : memref<1x!tpu.dma_semaphore, #tpu.memory_space<semaphore_mem>> -> memref<!tpu.dma_semaphore, #tpu.memory_space<semaphore_mem>>
      tpu.wait_dma2 semaphore(%46 : memref<!tpu.dma_semaphore, #tpu.memory_space<semaphore_mem>>) src(%arg3 : memref<256x256xbf16, #tpu.memory_space<any>>) dst(%arg7 : memref<256x256xbf16, #tpu.memory_space<vmem>>)
      %c0_i32_22 = arith.constant 0 : i32
      %c1_i32_23 = arith.constant 1 : i32
      %c0_i32_24 = arith.constant 0 : i32
      %c0_i32_25 = arith.constant 0 : i32
      %47 = tpu.memref_slice %arg8[%c0_i32_22, %c0_i32_24, %c0_i32_25] : memref<2x256x128xbf16, #tpu.memory_space<vmem>> -> memref<1x256x128xbf16, #tpu.memory_space<vmem>>
      %48 = tpu.memref_squeeze %47 : memref<1x256x128xbf16, #tpu.memory_space<vmem>> -> memref<256x128xbf16, #tpu.memory_space<vmem>>
      %49 = tpu.memref_slice %arg10[%c1_i32_23] : memref<3x!tpu.dma_semaphore, #tpu.memory_space<semaphore_mem>> -> memref<1x!tpu.dma_semaphore, #tpu.memory_space<semaphore_mem>>
      %50 = tpu.memref_squeeze %49 : memref<1x!tpu.dma_semaphore, #tpu.memory_space<semaphore_mem>> -> memref<!tpu.dma_semaphore, #tpu.memory_space<semaphore_mem>>
      tpu.wait_dma2 semaphore(%50 : memref<!tpu.dma_semaphore, #tpu.memory_space<semaphore_mem>>) src(%arg2 : memref<256x128xbf16, #tpu.memory_space<any>>) dst(%48 : memref<256x128xbf16, #tpu.memory_space<vmem>>)
    } else {
    }
    %c2_i32 = arith.constant 2 : i32
    %5 = arith.remsi %arg0, %c2_i32 : i32
    %c1_i32 = arith.constant 1 : i32
    %6 = arith.subi %c1_i32, %5 : i32
    %c256_i32 = arith.constant 256 : i32
    %7 = arith.muli %arg1, %c256_i32 : i32
    %8 = tpu.assume_multiple %7, 256 : i32
    %9 = arith.index_cast %8 : i32 to index
    %c0 = arith.constant 0 : index
    %10 = vector.load %arg7[%9, %c0] : memref<256x256xbf16, #tpu.memory_space<vmem>>, vector<256x256xbf16>
    %11 = arith.index_cast %5 : i32 to index
    %c0_2 = arith.constant 0 : index
    %c0_3 = arith.constant 0 : index
    %12 = vector.load %arg8[%11, %c0_2, %c0_3] : memref<2x256x128xbf16, #tpu.memory_space<vmem>>, vector<1x256x128xbf16>
    %13 = vector.shape_cast %12 : vector<1x256x128xbf16> to vector<256x128xbf16>
    %cst = arith.constant dense<0.000000e+00> : vector<256x128xf32>
    %14 = tpu.matmul %10, %13, %cst {dimension_numbers = #tpu.dot_dimension_numbers<[1], [0], [0], [1], [0, 0, 1, 1], [], []>} : vector<256x256xbf16>, vector<256x128xbf16>, vector<256x128xf32> -> vector<256x128xf32>
    %15 = arith.truncf %14 : vector<256x128xf32> to vector<256x128xbf16>
    %c0_4 = arith.constant 0 : index
    %c0_5 = arith.constant 0 : index
    %c0_6 = arith.constant 0 : index
    %16 = vector.load %arg4[%c0_4, %c0_5, %c0_6] : memref<1x128x128xbf16, #tpu.memory_space<vmem>>, vector<1x128x128xbf16>
    %17 = vector.shape_cast %16 : vector<1x128x128xbf16> to vector<128x128xbf16>
    %cst_7 = arith.constant dense<0.000000e+00> : vector<256x128xf32>
    %18 = tpu.matmul %15, %17, %cst_7 {dimension_numbers = #tpu.dot_dimension_numbers<[1], [0], [0], [1], [0, 0, 1, 1], [], []>} : vector<256x128xbf16>, vector<128x128xbf16>, vector<256x128xf32> -> vector<256x128xf32>
    %c0_8 = arith.constant 0 : index
    %c0_9 = arith.constant 0 : index
    %c0_10 = arith.constant 0 : index
    %19 = vector.load %arg5[%c0_8, %c0_9, %c0_10] : memref<1x256x128xf32, #tpu.memory_space<vmem>>, vector<1x256x128xf32>
    %20 = vector.shape_cast %19 : vector<1x256x128xf32> to vector<256x128xf32>
    %21 = arith.addf %18, %20 : vector<256x128xf32>
    %cst_11 = arith.constant 0.000000e+00 : f32
    %22 = vector.broadcast %cst_11 : f32 to vector<256x128xf32>
    %23 = arith.maximumf %21, %22 : vector<256x128xf32>
    %24 = arith.index_cast %5 : i32 to index
    %25 = arith.index_cast %8 : i32 to index
    %c0_12 = arith.constant 0 : index
    %26 = vector.load %arg8[%24, %25, %c0_12] : memref<2x256x128xbf16, #tpu.memory_space<vmem>>, vector<1x256x128xbf16>
    %27 = vector.shape_cast %26 : vector<1x256x128xbf16> to vector<256x128xbf16>
    %28 = arith.extf %27 : vector<256x128xbf16> to vector<256x128xf32>
    %29 = arith.addf %28, %23 : vector<256x128xf32>
    %30 = arith.truncf %29 : vector<256x128xf32> to vector<256x128xbf16>
    %31 = arith.index_cast %6 : i32 to index
    %32 = arith.index_cast %8 : i32 to index
    %c0_13 = arith.constant 0 : index
    %33 = vector.load %arg8[%31, %32, %c0_13] : memref<2x256x128xbf16, #tpu.memory_space<vmem>>, vector<1x256x128xbf16>
    %34 = vector.shape_cast %33 : vector<1x256x128xbf16> to vector<256x128xbf16>
    %35 = vector.shape_cast %30 : vector<256x128xbf16> to vector<1x256x128xbf16>
    tpu.vector_store %arg8[%31, %32, %c0_13], %35 {strides = array<i32>} : memref<2x256x128xbf16, #tpu.memory_space<vmem>>, vector<1x256x128xbf16>,
    %c2_i32_14 = arith.constant 2 : i32
    %36 = arith.cmpi eq, %arg0, %c2_i32_14 : i32
    %37 = arith.extui %36 : i1 to i32
    %c0_i32_15 = arith.constant 0 : i32
    %38 = arith.cmpi ne, %37, %c0_i32_15 : i32
    scf.if %38 {
      %c0_16 = arith.constant 0 : index
      %c0_17 = arith.constant 0 : index
      %39 = vector.load %arg9[%c0_16, %c0_17] : memref<256x128xf32, #tpu.memory_space<vmem>>, vector<256x128xf32>
      tpu.vector_store %arg9[%c0_16, %c0_17], %29 {strides = array<i32>} : memref<256x128xf32, #tpu.memory_space<vmem>>, vector<256x128xf32>,
      %c2_i32_18 = arith.constant 2 : i32
      %c0_i32_19 = arith.constant 0 : i32
      %c0_i32_20 = arith.constant 0 : i32
      %40 = tpu.memref_slice %arg6[%arg1, %c0_i32_19, %c0_i32_20] : memref<1x256x128xf32, #tpu.memory_space<any>> -> memref<1x256x128xf32, #tpu.memory_space<any>>
      %41 = tpu.memref_squeeze %40 : memref<1x256x128xf32, #tpu.memory_space<any>> -> memref<256x128xf32, #tpu.memory_space<any>>
      %42 = tpu.memref_slice %arg10[%c2_i32_18] : memref<3x!tpu.dma_semaphore, #tpu.memory_space<semaphore_mem>> -> memref<1x!tpu.dma_semaphore, #tpu.memory_space<semaphore_mem>>
      %43 = tpu.memref_squeeze %42 : memref<1x!tpu.dma_semaphore, #tpu.memory_space<semaphore_mem>> -> memref<!tpu.dma_semaphore, #tpu.memory_space<semaphore_mem>>
      tpu.enqueue_dma source(%arg9 : memref<256x128xf32, #tpu.memory_space<vmem>>) target(%41 : memref<256x128xf32, #tpu.memory_space<any>>) target_semaphore(%43 : memref<!tpu.dma_semaphore, #tpu.memory_space<semaphore_mem>>)
      %c2_i32_21 = arith.constant 2 : i32
      %c0_i32_22 = arith.constant 0 : i32
      %c0_i32_23 = arith.constant 0 : i32
      %44 = tpu.memref_slice %arg6[%arg1, %c0_i32_22, %c0_i32_23] : memref<1x256x128xf32, #tpu.memory_space<any>> -> memref<1x256x128xf32, #tpu.memory_space<any>>
      %45 = tpu.memref_squeeze %44 : memref<1x256x128xf32, #tpu.memory_space<any>> -> memref<256x128xf32, #tpu.memory_space<any>>
      %46 = tpu.memref_slice %arg10[%c2_i32_21] : memref<3x!tpu.dma_semaphore, #tpu.memory_space<semaphore_mem>> -> memref<1x!tpu.dma_semaphore, #tpu.memory_space<semaphore_mem>>
      %47 = tpu.memref_squeeze %46 : memref<1x!tpu.dma_semaphore, #tpu.memory_space<semaphore_mem>> -> memref<!tpu.dma_semaphore, #tpu.memory_space<semaphore_mem>>
      tpu.wait_dma2 semaphore(%47 : memref<!tpu.dma_semaphore, #tpu.memory_space<semaphore_mem>>) src(%arg9 : memref<256x128xf32, #tpu.memory_space<vmem>>) dst(%45 : memref<256x128xf32, #tpu.memory_space<any>>)
    } else {
    }
    return
  }
  func.func @transform_2(%arg0: i32, %arg1: i32) -> (i32, i32, i32) {
    %c0_i32 = arith.constant 0 : i32
    %c0_i32_0 = arith.constant 0 : i32
    %c0_i32_1 = arith.constant 0 : i32
    return %arg0, %c0_i32, %c0_i32_0 : i32, i32, i32
  }
  func.func @transform_3(%arg0: i32, %arg1: i32) -> (i32, i32, i32) {
    %c0_i32 = arith.constant 0 : i32
    %c0_i32_0 = arith.constant 0 : i32
    return %arg0, %arg1, %c0_i32 : i32, i32, i32
  }
}

</mosaic_0001>

<bundles_post_ra>
// kernel: tpu_custom_call.1
= control target key start
LH: loop header
LB: loop body
LE: loop exit
PB: predicated region body
PF: predicated region fallthrough
CT: control target
= control target key end

     0   :  { %9 = vsyncpa [#allocation7], 0  ;;  %s2434_s0 = inlined_call_operand.hbm [shape: bf16[256,128], index: 0, kind: input, shape index: {}]   ;;  %s2435_s1 = inlined_call_operand.hbm [shape: bf16[256,256], index: 1, kind: input, shape index: {}]   ;;  %s2436_s2 = inlined_call_operand.hbm [shape: bf16[3,128,128], index: 2, kind: input, shape index: {}]   ;;  %s2437_s3 = inlined_call_operand.hbm [shape: f32[3,256,128], index: 3, kind: input, shape index: {}]   ;;  %s2438_s4 = inlined_call_operand.hbm [shape: f32[1,256,128], index: 4, kind: output, shape index: {}]  }
   0x1   :  { %11 = vsyncpa [#allocation7 + $0x1], 0 }
   0x2   :  { %12 = vsyncpa [#allocation9], 0 }
   0x3   :  { %14 = vsyncpa [#allocation9 + $0x1], 0  ;;  %s2091_s15 = smov 0   ;;  %s2093_s16 = smov 0  }
   0x4   :  { %s2095_s17 = smov 0   ;;  %s2097_s18 = smov 0  }
   0x5   :  { %s2099_s19 = smov 0   ;;  %s2101_s20 = smov 0  }
   0x6 LB: > { %s1273_s21 = sadd.s32 4294967295, %s2057_s20   ;;  %s29_s22 = sadd.s32 1, %s2053_s19  ;;  %s2057_s20 = sphi %s2101_s20, %s20_s20   ;;  %s2053_s19 = sphi %s2099_s19, %s2446_s19   ;;  %s2049_s18 = sphi %s2097_s18, %s2445_s18   ;;  %s2045_s17 = sphi %s2095_s17, %s2444_s17   ;;  %s2041_s16 = sphi %s2093_s16, %s2443_s16   ;;  %s2037_s15 = sphi %s2091_s15, %s2442_s15  }
   0x7   : > { %p31_p0 = scmp.ge.s32.totalorder %s29_s22, 3  ;;  %s36_s23 = sadd.s32 1, %s2045_s17 }
   0x8   : > { %p42_p1 = scmp.ne.s32.totalorder %s2045_s17, %s2041_s16  ;;  %p43_p2 = scmp.eq.s32.totalorder %s2057_s20, 0 }
   0x9   : > { %s2448_s22 = smov (%p31_p0, %s29_s22), 0  ;;  %p49_p4 = scmp.ne.s32.totalorder %s2041_s16, %s2037_s15 }
   0xa   : > { %p2127_p3 = por %p43_p2, %p42_p1  ;;  %s33_s25 = ssub.s32 %s2053_s19, %s2448_s22 }
   0xb   : > { %p50_p5 = scmp.eq.s32.totalorder %s1273_s21, 0  ;;  %p34_p6 = scmp.eq.s32.totalorder %s33_s25, 0 }
   0xc   : > { %p1797_p8 = scmp.lt.s32.totalorder %s2057_s20, 3  ;;  %s2143_s28 = sand.u32 1, %s2045_s17  }
   0xd   : > { %p2134_p7 = por %p50_p5, %p49_p4  ;;  %s1522_s29 = sshll.u32 %s2053_s19, 6 }
   0xe   : > { %s2140_s27 = scalar_select %p34_p6, %s2045_s17, %s36_s23  }
   0xf   : > { %s1277_s30 = sshll.u32 %s2143_s28, 6  ;;  %s94_s7 = scalar_lea.hbm %s2436_s2, %s1522_s29 }
  0x10   : > { %s95_s8 = sshll.u32 %s94_s7, 4  ;;  %s89_s9 = scalar_lea.vmem [#allocation6], %s1277_s30  ;;  %s96_s8 = int_to_ptr.hbm [resolvable:$true] %s95_s8 }
  0x11   : > { %s97_s10 = sshll.u32 %s89_s9, 4  ;;  %p2152_p9 = pnand %p1797_p8, %p2127_p3  ;;  %s98_s10 = int_to_ptr.vmem [resolvable:$true] %s97_s10 }
  0x12   : > { %s1280_s12 = sshll.u32 %s2143_s28, 8  ;;  %s86_s13 = scalar_lea.sflag [#allocation7], %s2143_s28 }
  0x13   : > { %s2059_s14 = smov 64   ;;  %s2060_s15 = smov 4  }
  0x14   : > { %1793 = dma.hbm_to_vmem [thread:$0]  (!%p2152_p9), %s96_s8, 1024, %s98_s10, %s86_s13, %s2059_s14, %s2059_s14, %s2060_s15  }
  0x15   : > { %s1523_s21 = sshll.u32 %s2053_s19, 8  ;;  %s111_s30 = scalar_lea.vmem [#allocation8], %s1280_s12 }
  0x16   : > { %s118_s29 = scalar_lea.hbm %s2437_s3, %s1523_s21  ;;  %s121_s5 = sshll.u32 %s111_s30, 4  ;;  %s122_s5 = int_to_ptr.vmem [resolvable:$true] %s121_s5 }
  0x17   : > { %s119_s24 = sshll.u32 %s118_s29, 4  ;;  %s108_s6 = scalar_lea.sflag [#allocation9], %s2143_s28  ;;  %s120_s24 = int_to_ptr.hbm [resolvable:$true] %s119_s24 }
  0x18   : > { %s2061_s7 = smov 128   ;;  %s2062_s9 = smov 8  }
  0x19   : > { %1796 = dma.hbm_to_vmem [thread:$0]  (!%p2152_p9), %s120_s24, 4096, %s122_s5, %s108_s6, %s2061_s7, %s2061_s7, %s2062_s9  }
  0x1a   : > { %p1284_p10 = scmp.lt.s32.totalorder %s2057_s20, 1 }
  0x1b   : > { %s133_s8 = sand.u32 (!%p1284_p10), 1, %s2041_s16  }
  0x1c   : > { %131 = sbr.rel (%p1284_p10) target bundleno = 584 (0x248), region = 28  ;;  %s1285_s10 = sshll.u32 (!%p1284_p10), %s133_s8, 6 }
  0x1d   : > { %s134_s13 = scalar_lea.sflag (!%p1284_p10), [#allocation7], %s133_s8  ;;  %s2169_s14 = scalar_lea.vmem (!%p1284_p10), [#allocation6], %s1285_s10 }
  0x21   : > { %2018 = dma.done.wait (%p2134_p7), %s134_s13, 1024  }
  0x22   : > { %2020 = vsyncadd (%p2134_p7), %s134_s13, 4294966272  ;;  %s1286_s28 = sshll.u32 %s133_s8, 8  ;;  %s144_s12 = scalar_lea.sflag [#allocation9], %s133_s8 }
  0x23   : > { %s2175_s11 = scalar_lea.vmem [#allocation8], %s1286_s28 }
  0x24   : > { %2022 = dma.done.wait (%p2134_p7), %s144_s12, 4096  }
  0x25   : > { %2024 = vsyncadd (%p2134_p7), %s144_s12, 4294963200  ;;  %p168_p11 = scmp.eq.s32.totalorder %s2049_s18, 0  ;;  %s181_s23 = sshll.u32 %s2435_s1, 4  ;;  %s182_s23 = int_to_ptr.hbm [resolvable:$true] %s181_s23 }
  0x26   : > { %s2063_s25 = smov [#allocation2]   ;;  %s195_s24 = sshll.u32 %s2434_s0, 4  ;;  %s196_s24 = int_to_ptr.hbm [resolvable:$true] %s195_s24 }
  0x27   : > { %s183_s29 = sshll.u32 %s2063_s25, 4  ;;  %s2064_s26 = smov [#allocation3]   ;;  %s184_s29 = int_to_ptr.vmem [resolvable:$true] %s183_s29 }
  0x28   : > { %1786 = dma.hbm_to_vmem [thread:$0]  (%p168_p11), %s182_s23, 4096, %s184_s29, [#allocation5] }
  0x29   : > { %s197_s6 = sshll.u32 %s2064_s26, 4  ;;  %s198_s6 = int_to_ptr.vmem [resolvable:$true] %s197_s6 }
  0x2a   : > { %1787 = dma.hbm_to_vmem [thread:$0]  (%p168_p11), %s196_s24, 2048, %s198_s6, [#allocation5 + $0x1] }
  0x2b   : > { %2026 = dma.done.wait (%p168_p11), [#allocation5], 4096 }
  0x2c   : > { %2028 = vsyncadd (%p168_p11), [#allocation5], 4294963200 }
  0x2d   : > { %2030 = dma.done.wait (%p168_p11), [#allocation5 + $0x1], 2048 }
  0x2e   : > { %2032 = vsyncadd (%p168_p11), [#allocation5 + $0x1], 4294965248  ;;  %p208_p12 = scmp.lt.s32.totalorder %s2049_s18, 0  ;;  %s209_s7 = ssub.s32 0, %s2049_s18  ;;  %v1293_v14 = vld [vmem:[#allocation2] sm:$0xf] }
  0x2f   : > { %s1288_s9 = smin.u32 %s2049_s18, %s209_s7  ;;  %v1526_v15 = vld [vmem:[#allocation2 + $0x4] sm:$0xf0]  ;;  %v1389_v17 = vld [vmem:[#allocation2 + $0xc0] sm:$0xf]  ;;  %v1525_v20 = vld [vmem:[#allocation2 + $0x4] sm:$0xf] }
  0x30   : > { %s211_s8 = sand.u32 1, %s1288_s9   ;;  %v1550_v18 = vld [vmem:[#allocation2 + $0xc4] sm:$0xf0]  ;;  %v1295_v21 = vld [vmem:[#allocation2 + $0x8] sm:$0xf0]  ;;  %v1294_v22 = vor.u32 %v1526_v15, %v1293_v14  ;;  %v1581_v61 = vld [vmem:[%s2169_s14 + $0x38] sm:$0xff] }
  0x31   : > { %s212_s10 = ssub.s32 0, %s211_s8  ;;  %v1390_v23 = vor.u32 %v1550_v18, %v1389_v17  ;;  %v1298_v24 = vor.u32 %v1525_v20, %v1295_v21  ;;  %v1301_v25 = vld [vmem:[#allocation2 + $0x10] sm:$0xf]  ;;  %v1528_v26 = vld [vmem:[#allocation2 + $0x14] sm:$0xf0]  ;;  %834 = vmatpush.bf16.msra.mxu2 %v1581_v61  ;;  %v1575_v21 = vld [vmem:[%s2169_s14 + $0x8] sm:$0xff] }
  0x32   : > { %s2450_s10 = smov (!%p208_p12, %s212_s10), %s211_s8  ;;  %v1397_v27 = vld [vmem:[#allocation2 + $0xd0] sm:$0xf]  ;;  %v1552_v28 = vld [vmem:[#allocation2 + $0xd4] sm:$0xf0]  ;;  %v1527_v29 = vld [vmem:[#allocation2 + $0x14] sm:$0xf]  ;;  %v1302_v31 = vor.u32 %v1528_v26, %v1301_v25 }
  0x33   : > { %s1557_s13 = sshll.u32 %s2450_s10, 7  ;;  %v1303_v30 = vld [vmem:[#allocation2 + $0x18] sm:$0xf0]  ;;  %v1398_v32 = vor.u32 %v1552_v28, %v1397_v27  ;;  %v1309_v34 = vld [vmem:[#allocation2 + $0x20] sm:$0xf]  ;;  %v1580_v62 = vld [vmem:[%s2169_s14 + $0x30] sm:$0xff] }
  0x34   : > { %s2206_s28 = scalar_lea.vmem [#allocation3], %s1557_s13  ;;  %v1306_v33 = vor.u32 %v1527_v29, %v1303_v30  ;;  %v1530_v35 = vld [vmem:[#allocation2 + $0x24] sm:$0xf0]  ;;  %v1405_v36 = vld [vmem:[#allocation2 + $0xe0] sm:$0xf]  ;;  %v1576_v20 = vld [vmem:[%s2169_s14 + $0x10] sm:$0xff] }
  0x35   : > { %v1565_v0 = vld [vmem:[%s2206_s28 + $0x38] sm:$0xff]  ;;  %v1564_v2 = vld [vmem:[%s2206_s28 + $0x30] sm:$0xff]  ;;  %v1563_v4 = vld [vmem:[%s2206_s28 + $0x28] sm:$0xff]  ;;  %v1310_v40 = vor.u32 %v1530_v35, %v1309_v34  ;;  %835 = vmatpush.bf16.msra.mxu2 %v1580_v62  ;;  %p1518_p13 = scmp.ne.s32.totalorder %s2049_s18, 2 }
  0x36   : > { %v1573_v1 = vld [vmem:[%s2206_s28 + $0x78] sm:$0xff]  ;;  %544 = vmatpush.bf16.msra.mxu0 %v1565_v0  ;;  %1758 = vmatpush.bf16.msra.mxu3 %v1565_v0  ;;  %v1572_v3 = vld [vmem:[%s2206_s28 + $0x70] sm:$0xff]  ;;  %v1571_v5 = vld [vmem:[%s2206_s28 + $0x68] sm:$0xff]  ;;  %s2065_s18 = smov (!%p1518_p13), [#allocation4]   ;;  %s1169_s25 = sshll.u32 (!%p1518_p13), %s2438_s4, 4  ;;  %s1170_s25 = int_to_ptr.hbm [resolvable:$true] %s1169_s25 }
  0x37   : > { %633 = vmatpush.bf16.msra.mxu1 %v1573_v1  ;;  %v1562_v6 = vld [vmem:[%s2206_s28 + $0x20] sm:$0xff]  ;;  %v1561_v8 = vld [vmem:[%s2206_s28 + $0x18] sm:$0xff]  ;;  %v1560_v10 = vld [vmem:[%s2206_s28 + $0x10] sm:$0xff] }
  0x38   : > { %v1570_v7 = vld [vmem:[%s2206_s28 + $0x60] sm:$0xff]  ;;  %v1569_v9 = vld [vmem:[%s2206_s28 + $0x58] sm:$0xff]  ;;  %v1568_v11 = vld [vmem:[%s2206_s28 + $0x50] sm:$0xff] }
  0x39   : > { %v1559_v12 = vld [vmem:[%s2206_s28 + $0x8] sm:$0xff]  ;;  %v1558_v16 = vld [vmem:[%s2206_s28] sm:$0xff]  ;;  %v1317_v43 = vld [vmem:[#allocation2 + $0x30] sm:$0xf] }
  0x3a   : > { %545 = vmatpush.bf16.msra.mxu0 %v1564_v2  ;;  %1759 = vmatpush.bf16.msra.mxu3 %v1564_v2  ;;  %v1567_v13 = vld [vmem:[%s2206_s28 + $0x48] sm:$0xff]  ;;  %v1566_v19 = vld [vmem:[%s2206_s28 + $0x40] sm:$0xff]  ;;  %v1532_v44 = vld [vmem:[#allocation2 + $0x34] sm:$0xf0] }
  0x3b   : > { %634 = vmatpush.bf16.msra.mxu1 %v1572_v3  ;;  %v1554_v37 = vld [vmem:[#allocation2 + $0xe4] sm:$0xf0]  ;;  %v1529_v38 = vld [vmem:[#allocation2 + $0x24] sm:$0xf]  ;;  %v1311_v39 = vld [vmem:[#allocation2 + $0x28] sm:$0xf0]  ;;  %v1318_v49 = vor.u32 %v1532_v44, %v1317_v43 }
  0x3c   : > { %v1406_v41 = vor.u32 %v1554_v37, %v1405_v36  ;;  %v1314_v42 = vor.u32 %v1529_v38, %v1311_v39  ;;  %v1413_v45 = vld [vmem:[#allocation2 + $0xf0] sm:$0xf]  ;;  %v1556_v46 = vld [vmem:[#allocation2 + $0xf4] sm:$0xf0]  ;;  %v1531_v47 = vld [vmem:[#allocation2 + $0x34] sm:$0xf] }
  0x3d   : > { %v1319_v48 = vld [vmem:[#allocation2 + $0x38] sm:$0xf0]  ;;  %v1414_v50 = vor.u32 %v1556_v46, %v1413_v45  ;;  %v1325_v52 = vld [vmem:[#allocation2 + $0x40] sm:$0xf]  ;;  %v1534_v53 = vld [vmem:[#allocation2 + $0x44] sm:$0xf0] }
  0x3e   : > { %546 = vmatpush.bf16.msra.mxu0 %v1563_v4  ;;  %1760 = vmatpush.bf16.msra.mxu3 %v1563_v4  ;;  %v1322_v51 = vor.u32 %v1531_v47, %v1319_v48  ;;  %v1549_v54 = vld [vmem:[#allocation2 + $0xc4] sm:$0xf]  ;;  %v1391_v55 = vld [vmem:[#allocation2 + $0xc8] sm:$0xf0]  ;;  %v1326_v58 = vor.u32 %v1534_v53, %v1325_v52  ;;  %v1333_v63 = vld [vmem:[#allocation2 + $0x50] sm:$0xf] }
  0x3f   : > { %635 = vmatpush.bf16.msra.mxu1 %v1571_v5  ;;  %v1533_v56 = vld [vmem:[#allocation2 + $0x44] sm:$0xf]  ;;  %v1327_v57 = vld [vmem:[#allocation2 + $0x48] sm:$0xf0]  ;;  %v1394_v59 = vor.u32 %v1549_v54, %v1391_v55  ;;  %v1536_v0 = vld [vmem:[#allocation2 + $0x54] sm:$0xf0] }
  0x40   : > { %v1330_v60 = vor.u32 %v1533_v56, %v1327_v57  ;;  %v1399_v2 = vld [vmem:[#allocation2 + $0xd8] sm:$0xf0]  ;;  %v1407_v14 = vld [vmem:[#allocation2 + $0xe8] sm:$0xf0]  ;;  %v1537_v15 = vld [vmem:[#allocation2 + $0x64] sm:$0xf] }
  0x41   : > { %v1335_v4 = vld [vmem:[#allocation2 + $0x58] sm:$0xf0]  ;;  %v1555_v25 = vld [vmem:[#allocation2 + $0xf4] sm:$0xf]  ;;  %v1541_v34 = vld [vmem:[#allocation2 + $0x84] sm:$0xf] }
  0x42   : > { %547 = vmatpush.bf16.msra.mxu0 %v1562_v6  ;;  %1761 = vmatpush.bf16.msra.mxu3 %v1562_v6  ;;  %v1415_v26 = vld [vmem:[#allocation2 + $0xf8] sm:$0xf0]  ;;  %v1539_v27 = vld [vmem:[#allocation2 + $0x74] sm:$0xf]  ;;  %v1359_v35 = vld [vmem:[#allocation2 + $0x88] sm:$0xf0] }
  0x43   : > { %636 = vmatpush.bf16.msra.mxu1 %v1570_v7  ;;  %v1351_v28 = vld [vmem:[#allocation2 + $0x78] sm:$0xf0]  ;;  %v1418_v30 = vor.u32 %v1555_v25, %v1415_v26  ;;  %v1362_v38 = vor.u32 %v1541_v34, %v1359_v35  ;;  %v1365_v46 = vld [vmem:[#allocation2 + $0x90] sm:$0xf]  ;;  %v1544_v47 = vld [vmem:[#allocation2 + $0x94] sm:$0xf0] }
  0x44   : > { %v1543_v48 = vld [vmem:[#allocation2 + $0x94] sm:$0xf] }
  0x46   : > { %548 = vmatpush.bf16.msra.mxu0 %v1561_v8  ;;  %1762 = vmatpush.bf16.msra.mxu3 %v1561_v8  ;;  %v1579_v8 = vld [vmem:[%s2169_s14 + $0x28] sm:$0xff] }
  0x47   : > { %637 = vmatpush.bf16.msra.mxu1 %v1569_v9  ;;  %836 = vmatpush.bf16.msra.mxu2 %v1579_v8 }
  0x4a   : > { %549 = vmatpush.bf16.msra.mxu0 %v1560_v10  ;;  %1763 = vmatpush.bf16.msra.mxu3 %v1560_v10  ;;  %v1577_v10 = vld [vmem:[%s2169_s14 + $0x18] sm:$0xff] }
  0x4b   : > { %638 = vmatpush.bf16.msra.mxu1 %v1568_v11 }
  0x4e   : > { %550 = vmatpush.bf16.msra.mxu0 %v1559_v12  ;;  %1764 = vmatpush.bf16.msra.mxu3 %v1559_v12  ;;  %v1538_v12 = vld [vmem:[#allocation2 + $0x64] sm:$0xf0] }
  0x4f   : > { %639 = vmatpush.bf16.msra.mxu1 %v1567_v13 }
  0x52   : > { %551 = vmatpush.bf16.msra.mxu0 %v1558_v16  ;;  %1765 = vmatpush.bf16.msra.mxu3 %v1558_v16  ;;  %v1343_v16 = vld [vmem:[#allocation2 + $0x68] sm:$0xf0] }
  0x53   : > { %640 = vmatpush.bf16.msra.mxu1 %v1566_v19 }
  0x55   : > { %552 = vmatmul.bf16.vlgmr.msra.gmra.mxu0 %v1294_v22  ;;  %612 = vmatmul.bf16.vlgmr.msra.gmra.mxu3 %v1390_v23  ;;  %v1574_v22 = vld [vmem:[%s2169_s14] sm:$0xff]  ;;  %v1349_v23 = vld [vmem:[#allocation2 + $0x70] sm:$0xf] }
  0x56   : > { %1766 = vmatpush.bf16.msrb.mxu3 %v1573_v1  ;;  %641 = vmatmul.bf16.vlgmr.msra.gmra.mxu1 %v1298_v24  ;;  %v1551_v1 = vld [vmem:[#allocation2 + $0xd4] sm:$0xf]  ;;  %v1540_v24 = vld [vmem:[#allocation2 + $0x74] sm:$0xf0] }
  0x57   : > { %v1402_v6 = vor.u32 %v1551_v1, %v1399_v2  ;;  %v1350_v29 = vor.u32 %v1540_v24, %v1349_v23 }
  0x5a   : > { %1767 = vmatpush.bf16.msrb.mxu3 %v1572_v3  ;;  %v1535_v3 = vld [vmem:[#allocation2 + $0x54] sm:$0xf] }
  0x5e   : > { %1768 = vmatpush.bf16.msrb.mxu3 %v1571_v5  ;;  %v1334_v5 = vor.u32 %v1536_v0, %v1333_v63  ;;  %v1545_v63 = vld [vmem:[#allocation2 + $0xa4] sm:$0xf]  ;;  %v1375_v0 = vld [vmem:[#allocation2 + $0xa8] sm:$0xf0] }
  0x62   : > { %1769 = vmatpush.bf16.msrb.mxu3 %v1570_v7  ;;  %v1338_v7 = vor.u32 %v1535_v3, %v1335_v4  ;;  %v1378_v4 = vor.u32 %v1545_v63, %v1375_v0 }
  0x65   : > { %557 = vmatmul.bf16.gmra.mxu0 %v1302_v31  ;;  %617 = vmatmul.bf16.gmra.mxu3 %v1398_v32  ;;  %v1354_v31 = vor.u32 %v1539_v27, %v1351_v28  ;;  %v1357_v32 = vld [vmem:[#allocation2 + $0x80] sm:$0xf] }
  0x66   : > { %1770 = vmatpush.bf16.msrb.mxu3 %v1569_v9  ;;  %646 = vmatmul.bf16.gmra.mxu1 %v1306_v33  ;;  %v1578_v9 = vld [vmem:[%s2169_s14 + $0x20] sm:$0xff]  ;;  %v1542_v33 = vld [vmem:[#allocation2 + $0x84] sm:$0xf0]  ;;  %s214_s14 = ssub.s32 1, %s2450_s10 }
  0x67   : > { %837 = vmatpush.bf16.msra.mxu2 %v1578_v9  ;;  %v1358_v36 = vor.u32 %v1542_v33, %v1357_v32  ;;  %s1583_s12 = sshll.u32 %s214_s14, 7 }
  0x68   : > { %s2251_s15 = scalar_lea.vmem [#allocation3], %s1583_s12 }
  0x6a   : > { %1771 = vmatpush.bf16.msrb.mxu3 %v1568_v11  ;;  %v1341_v11 = vld [vmem:[#allocation2 + $0x60] sm:$0xf] }
  0x6b   : > { %838 = vmatpush.bf16.msra.mxu2 %v1577_v10  ;;  %v1342_v17 = vor.u32 %v1538_v12, %v1341_v11  ;;  %v1381_v12 = vld [vmem:[#allocation2 + $0xb0] sm:$0xf] }
  0x6e   : > { %1772 = vmatpush.bf16.msrb.mxu3 %v1567_v13  ;;  %v1553_v13 = vld [vmem:[#allocation2 + $0xe4] sm:$0xf] }
  0x6f   : > { %v1410_v18 = vor.u32 %v1553_v13, %v1407_v14  ;;  %839 = vmatpush.bf16.msra.mxu2 %v1576_v20  ;;  %v1548_v13 = vld [vmem:[#allocation2 + $0xb4] sm:$0xf0]  ;;  %v1547_v14 = vld [vmem:[#allocation2 + $0xb4] sm:$0xf] }
  0x72   : > { %1773 = vmatpush.bf16.msrb.mxu3 %v1566_v19  ;;  %v1346_v19 = vor.u32 %v1537_v15, %v1343_v16  ;;  %v1383_v15 = vld [vmem:[#allocation2 + $0xb8] sm:$0xf0] }
  0x73   : > { %840 = vmatpush.bf16.msra.mxu2 %v1575_v21 }
  0x75   : > { %562 = vmatmul.bf16.gmra.mxu0 %v1310_v40  ;;  %622 = vmatmul.bf16.gmra.mxu3 %v1406_v41 }
  0x76   : > { %651 = vmatmul.bf16.gmra.mxu1 %v1314_v42  ;;  %1774 = vmatpush.bf16.msra.mxu3 %v1581_v61  ;;  %v1373_v61 = vld [vmem:[#allocation2 + $0xa0] sm:$0xf] }
  0x77   : > { %841 = vmatpush.bf16.msra.mxu2 %v1574_v22 }
  0x7a   : > { %1775 = vmatpush.bf16.msra.mxu3 %v1580_v62  ;;  %v1546_v62 = vld [vmem:[#allocation2 + $0xa4] sm:$0xf0] }
  0x7b   : > { %v1374_v2 = vor.u32 %v1546_v62, %v1373_v61 }
  0x7e   : > { %1776 = vmatpush.bf16.msra.mxu3 %v1579_v8 }
  0x82   : > { %1777 = vmatpush.bf16.msra.mxu3 %v1578_v9 }
  0x85   : > { %567 = vmatmul.bf16.gmra.mxu0 %v1318_v49  ;;  %627 = vmatmul.bf16.gmra.mxu3 %v1414_v50  ;;  %v1367_v49 = vld [vmem:[#allocation2 + $0x98] sm:$0xf0] }
  0x86   : > { %656 = vmatmul.bf16.gmra.mxu1 %v1322_v51  ;;  %1778 = vmatpush.bf16.msra.mxu3 %v1577_v10  ;;  %v1366_v51 = vor.u32 %v1544_v47, %v1365_v46  ;;  %v1370_v53 = vor.u32 %v1543_v48, %v1367_v49 }
  0x8a   : > { %1779 = vmatpush.bf16.msra.mxu3 %v1576_v20 }
  0x8e   : > { %1780 = vmatpush.bf16.msra.mxu3 %v1575_v21 }
  0x92   : > { %1781 = vmatpush.bf16.msra.mxu3 %v1574_v22 }
  0x95   : > { %572 = vmatmul.bf16.gmra.mxu0 %v1326_v58  ;;  %701 = vmatmul.bf16.vlgmr.msrb.gmra.mxu3 %v1394_v59 }
  0x96   : > { %661 = vmatmul.bf16.gmra.mxu1 %v1330_v60 }
  0xa5   : > { %577 = vmatmul.bf16.gmra.mxu0 %v1334_v5  ;;  %706 = vmatmul.bf16.gmra.mxu3 %v1402_v6 }
  0xa6   : > { %666 = vmatmul.bf16.gmra.mxu1 %v1338_v7 }
  0xb5   : > { %582 = vmatmul.bf16.gmra.mxu0 %v1342_v17  ;;  %711 = vmatmul.bf16.gmra.mxu3 %v1410_v18  ;;  %v1382_v17 = vor.u32 %v1548_v13, %v1381_v12 }
  0xb6   : > { %671 = vmatmul.bf16.gmra.mxu1 %v1346_v19  ;;  %v1386_v19 = vor.u32 %v1547_v14, %v1383_v15 }
  0xc5   : > { %587 = vmatmul.bf16.gmra.mxu0 %v1350_v29  ;;  %716 = vmatmul.bf16.gmra.mxu3 %v1418_v30 }
  0xc6   : > { %676 = vmatmul.bf16.gmra.mxu1 %v1354_v31 }
  0xd2   : > { %v553_v37 = vpop.f32.mrf.mxu0 }
  0xd3   : > { %v642_v39 = vpop.f32.mrf.mxu1 }
  0xd4   : > { %v643_v43 = vadd.f32 %v642_v39, %v553_v37 }
  0xd5   : > { %592 = vmatmul.bf16.gmra.mxu0 %v1358_v36 }
  0xd6   : > { %681 = vmatmul.bf16.gmra.mxu1 %v1362_v38 }
  0xd8   : > { %v2232_v40 = vpop.f32.mrf.mxu3 }
  0xda   : > { %v555_v41 = vpop.f32.mrf.mxu0 }
  0xdb   : > { %v644_v42 = vpop.f32.mrf.mxu1 }
  0xdc   : > { %v645_v44 = vadd.f32 %v644_v42, %v555_v41 }
  0xde   : > { %v722_v45 = vpack.c.bf16 %v645_v44, %v643_v43 }
  0xe0   : > { %842 = vmatmul.bf16.vlgmr.msra.gmra.mxu2 %v722_v45  ;;  %v615_v50 = vpop.f32.mrf.mxu3 }
  0xe2   : > { %v558_v52 = vpop.f32.mrf.mxu0 }
  0xe3   : > { %v647_v54 = vpop.f32.mrf.mxu1 }
  0xe4   : > { %v648_v58 = vadd.f32 %v647_v54, %v558_v52 }
  0xe5   : > { %597 = vmatmul.bf16.gmra.mxu0 %v1366_v51 }
  0xe6   : > { %686 = vmatmul.bf16.gmra.mxu1 %v1370_v53 }
  0xe8   : > { %v2234_v55 = vpop.f32.mrf.mxu3 }
  0xea   : > { %v560_v56 = vpop.f32.mrf.mxu0 }
  0xeb   : > { %v649_v57 = vpop.f32.mrf.mxu1 }
  0xec   : > { %v650_v59 = vadd.f32 %v649_v57, %v560_v56 }
  0xee   : > { %v723_v60 = vpack.c.bf16 %v650_v59, %v648_v58 }
  0xf0   : > { %847 = vmatmul.bf16.gmra.mxu2 %v723_v60  ;;  %v620_v1 = vpop.f32.mrf.mxu3 }
  0xf2   : > { %v563_v3 = vpop.f32.mrf.mxu0 }
  0xf3   : > { %v652_v5 = vpop.f32.mrf.mxu1 }
  0xf4   : > { %v653_v9 = vadd.f32 %v652_v5, %v563_v3 }
  0xf5   : > { %602 = vmatmul.bf16.gmra.mxu0 %v1374_v2 }
  0xf6   : > { %691 = vmatmul.bf16.gmra.mxu1 %v1378_v4 }
  0xf8   : > { %v2236_v6 = vpop.f32.mrf.mxu3 }
  0xfa   : > { %v565_v7 = vpop.f32.mrf.mxu0 }
  0xfb   : > { %v654_v8 = vpop.f32.mrf.mxu1 }
  0xfc   : > { %v655_v10 = vadd.f32 %v654_v8, %v565_v7 }
  0xfe   : > { %v724_v11 = vpack.c.bf16 %v655_v10, %v653_v9 }
 0x100   : > { %852 = vmatmul.bf16.gmra.mxu2 %v724_v11  ;;  %v625_v16 = vpop.f32.mrf.mxu3 }
 0x102   : > { %v568_v18 = vpop.f32.mrf.mxu0 }
 0x103   : > { %v657_v20 = vpop.f32.mrf.mxu1 }
 0x104   : > { %v658_v24 = vadd.f32 %v657_v20, %v568_v18 }
 0x105   : > { %607 = vmatmul.bf16.gmra.mxu0 %v1382_v17 }
 0x106   : > { %696 = vmatmul.bf16.gmra.mxu1 %v1386_v19 }
 0x108   : > { %v628_v21 = vpop.f32.mrf.mxu3 }
 0x10a   : > { %v570_v22 = vpop.f32.mrf.mxu0 }
 0x10b   : > { %v659_v23 = vpop.f32.mrf.mxu1 }
 0x10c   : > { %v660_v25 = vadd.f32 %v659_v23, %v570_v22  ;;  %v754_v23 = vld [vmem:[%s2175_s11] sm:$0xff] }
 0x10e   : > { %v725_v26 = vpack.c.bf16 %v660_v25, %v658_v24  ;;  %v755_v25 = vld [vmem:[%s2175_s11 + $0x8] sm:$0xff] }
 0x110   : > { %857 = vmatmul.bf16.gmra.mxu2 %v725_v26  ;;  %v630_v27 = vpop.f32.mrf.mxu3 }
 0x112   : > { %v573_v28 = vpop.f32.mrf.mxu0 }
 0x113   : > { %v662_v29 = vpop.f32.mrf.mxu1 }
 0x114   : > { %v663_v33 = vadd.f32 %v662_v29, %v573_v28 }
 0x118   : > { %v702_v30 = vpop.f32.mrf.mxu3 }
 0x119   : > { %v703_v37 = vadd.f32 %v702_v30, %v2232_v40 }
 0x11a   : > { %v575_v31 = vpop.f32.mrf.mxu0 }
 0x11b   : > { %v664_v32 = vpop.f32.mrf.mxu1 }
 0x11c   : > { %v665_v34 = vadd.f32 %v664_v32, %v575_v31 }
 0x11e   : > { %v726_v35 = vpack.c.bf16 %v665_v34, %v663_v33 }
 0x120   : > { %862 = vmatmul.bf16.gmra.mxu2 %v726_v35  ;;  %v704_v36 = vpop.f32.mrf.mxu3 }
 0x121   : > { %v705_v38 = vadd.f32 %v704_v36, %v615_v50 }
 0x122   : > { %v578_v39 = vpop.f32.mrf.mxu0 }
 0x123   : > { %v734_v41 = vpack.c.bf16 %v705_v38, %v703_v37  ;;  %v667_v42 = vpop.f32.mrf.mxu1 }
 0x124   : > { %v668_v46 = vadd.f32 %v667_v42, %v578_v39 }
 0x125   : > { %902 = vmatmul.bf16.vlgmr.msra.gmra.mxu3 %v734_v41 }
 0x128   : > { %v707_v43 = vpop.f32.mrf.mxu3 }
 0x129   : > { %v708_v51 = vadd.f32 %v707_v43, %v2234_v55 }
 0x12a   : > { %v580_v44 = vpop.f32.mrf.mxu0 }
 0x12b   : > { %v669_v45 = vpop.f32.mrf.mxu1 }
 0x12c   : > { %v670_v47 = vadd.f32 %v669_v45, %v580_v44  ;;  %v756_v44 = vld [vmem:[%s2175_s11 + $0x10] sm:$0xff] }
 0x12e   : > { %v727_v48 = vpack.c.bf16 %v670_v47, %v668_v46  ;;  %v757_v47 = vld [vmem:[%s2175_s11 + $0x18] sm:$0xff] }
 0x130   : > { %867 = vmatmul.bf16.gmra.mxu2 %v727_v48  ;;  %v709_v49 = vpop.f32.mrf.mxu3 }
 0x131   : > { %v710_v52 = vadd.f32 %v709_v49, %v620_v1 }
 0x132   : > { %v583_v53 = vpop.f32.mrf.mxu0 }
 0x133   : > { %v672_v54 = vpop.f32.mrf.mxu1  ;;  %v735_v56 = vpack.c.bf16 %v710_v52, %v708_v51 }
 0x134   : > { %v673_v58 = vadd.f32 %v672_v54, %v583_v53 }
 0x135   : > { %907 = vmatmul.bf16.gmra.mxu3 %v735_v56 }
 0x138   : > { %v712_v40 = vpop.f32.mrf.mxu3 }
 0x139   : > { %v713_v62 = vadd.f32 %v712_v40, %v2236_v6 }
 0x13a   : > { %v585_v50 = vpop.f32.mrf.mxu0 }
 0x13b   : > { %v674_v57 = vpop.f32.mrf.mxu1 }
 0x13c   : > { %v675_v59 = vadd.f32 %v674_v57, %v585_v50 }
 0x13e   : > { %v728_v60 = vpack.c.bf16 %v675_v59, %v673_v58 }
 0x140   : > { %872 = vmatmul.bf16.gmra.mxu2 %v728_v60  ;;  %v714_v61 = vpop.f32.mrf.mxu3 }
 0x141   : > { %v715_v63 = vadd.f32 %v714_v61, %v625_v16 }
 0x142   : > { %v588_v0 = vpop.f32.mrf.mxu0 }
 0x143   : > { %v677_v2 = vpop.f32.mrf.mxu1  ;;  %v736_v3 = vpack.c.bf16 %v715_v63, %v713_v62 }
 0x144   : > { %v678_v5 = vadd.f32 %v677_v2, %v588_v0  ;;  %v758_v2 = vld [vmem:[%s2175_s11 + $0x20] sm:$0xff] }
 0x145   : > { %912 = vmatmul.bf16.gmra.mxu3 %v736_v3 }
 0x148   : > { %v717_v55 = vpop.f32.mrf.mxu3 }
 0x149   : > { %v718_v10 = vadd.f32 %v717_v55, %v628_v21  ;;  %v1585_v21 = vld [vmem:[%s2206_s28] sm:$0xff]  }
 0x14a   : > { %v590_v1 = vpop.f32.mrf.mxu0  ;;  %v1587_v30 = vunpack.c.h.bf16 %v1585_v21 }
 0x14b   : > { %v679_v4 = vpop.f32.mrf.mxu1 }
 0x14c   : > { %v680_v7 = vadd.f32 %v679_v4, %v590_v1  ;;  %v759_v1 = vld [vmem:[%s2175_s11 + $0x28] sm:$0xff] }
 0x14e   : > { %v729_v8 = vpack.c.bf16 %v680_v7, %v678_v5 }
 0x150   : > { %877 = vmatmul.bf16.gmra.mxu2 %v729_v8  ;;  %v719_v9 = vpop.f32.mrf.mxu3 }
 0x151   : > { %v720_v11 = vadd.f32 %v719_v9, %v630_v27  ;;  %v1586_v27 = vunpack.c.l.bf16 %v1585_v21 }
 0x152   : > { %v593_v12 = vpop.f32.mrf.mxu0 }
 0x153   : > { %v682_v6 = vpop.f32.mrf.mxu1  ;;  %v737_v13 = vpack.c.bf16 %v720_v11, %v718_v10 }
 0x154   : > { %v683_v16 = vadd.f32 %v682_v6, %v593_v12 }
 0x155   : > { %917 = vmatmul.bf16.gmra.mxu3 %v737_v13 }
 0x15a   : > { %v595_v14 = vpop.f32.mrf.mxu0 }
 0x15b   : > { %v684_v15 = vpop.f32.mrf.mxu1 }
 0x15c   : > { %v685_v17 = vadd.f32 %v684_v15, %v595_v14 }
 0x15e   : > { %v730_v18 = vpack.c.bf16 %v685_v17, %v683_v16 }
 0x160   : > { %882 = vmatmul.bf16.gmra.mxu2 %v730_v18 }
 0x162   : > { %v598_v19 = vpop.f32.mrf.mxu0 }
 0x163   : > { %v687_v20 = vpop.f32.mrf.mxu1  ;;  %v843_v22 = vpop.f32.mrf.mxu2 }
 0x164   : > { %v844_v24 = vadd.f32 %v843_v22, %v754_v23  ;;  %v688_v31 = vadd.f32 %v687_v20, %v598_v19  ;;  %v760_v19 = vld [vmem:[%s2175_s11 + $0x30] sm:$0xff]  ;;  %v761_v23 = vld [vmem:[%s2175_s11 + $0x38] sm:$0xff] }
 0x166   : > { %v923_v32 = vmax.f32 %v844_v24, 0.0 }
 0x168   : > { %v2245_v37 = vadd.f32 %v1586_v27, %v923_v32 }
 0x16a   : > { %v600_v26 = vpop.f32.mrf.mxu0 }
 0x16b   : > { %v689_v28 = vpop.f32.mrf.mxu1  ;;  %v845_v29 = vpop.f32.mrf.mxu2 }
 0x16c   : > { %v690_v33 = vadd.f32 %v689_v28, %v600_v26  ;;  %v846_v34 = vadd.f32 %v845_v29, %v755_v25 }
 0x16e   : > { %v924_v35 = vmax.f32 %v846_v34, 0.0  ;;  %v731_v36 = vpack.c.bf16 %v690_v33, %v688_v31  ;;  %v762_v33 = vld [vmem:[%s2175_s11 + $0x40] sm:$0xff] }
 0x170   : > { %v2247_v38 = vadd.f32 %v1587_v30, %v924_v35  ;;  %887 = vmatmul.bf16.gmra.mxu2 %v731_v36 }
 0x172   : > { %v1651_v39 = vpack.c.bf16 %v2247_v38, %v2245_v37  ;;  %v603_v41 = vpop.f32.mrf.mxu0 }
 0x173   : > { %v692_v42 = vpop.f32.mrf.mxu1  ;;  %v848_v43 = vpop.f32.mrf.mxu2 }
 0x174   : > { %1652 = vst [vmem:[%s2251_s15] sm:$0xff] %v1651_v39   ;;  %v849_v45 = vadd.f32 %v848_v43, %v756_v44  ;;  %v693_v54 = vadd.f32 %v692_v42, %v603_v41  ;;  %v763_v39 = vld [vmem:[%s2175_s11 + $0x48] sm:$0xff]  ;;  %v778_v41 = vld [vmem:[%s2175_s11 + $0xc0] sm:$0xff] }
 0x176   : > { %v925_v56 = vmax.f32 %v849_v45, 0.0 }
 0x17a   : > { %v605_v48 = vpop.f32.mrf.mxu0 }
 0x17b   : > { %v1728_v46 = vld [vmem:[%s2206_s28 + $0x8] sm:$0xff]   ;;  %v694_v51 = vpop.f32.mrf.mxu1  ;;  %v850_v52 = vpop.f32.mrf.mxu2 }
 0x17c   : > { %v1590_v49 = vunpack.c.l.bf16 %v1728_v46  ;;  %v1591_v53 = vunpack.c.h.bf16 %v1728_v46  ;;  %v695_v40 = vadd.f32 %v694_v51, %v605_v48  ;;  %v851_v50 = vadd.f32 %v850_v52, %v757_v47  ;;  %v779_v51 = vld [vmem:[%s2175_s11 + $0xc8] sm:$0xff] }
 0x17e   : > { %v926_v57 = vmax.f32 %v851_v50, 0.0  ;;  %v732_v58 = vpack.c.bf16 %v695_v40, %v693_v54  ;;  %v2257_v59 = vadd.f32 %v1590_v49, %v925_v56 }
 0x180   : > { %v2259_v60 = vadd.f32 %v1591_v53, %v926_v57  ;;  %892 = vmatmul.bf16.gmra.mxu2 %v732_v58 }
 0x182   : > { %v1656_v61 = vpack.c.bf16 %v2259_v60, %v2257_v59  ;;  %v608_v62 = vpop.f32.mrf.mxu0 }
 0x183   : > { %v697_v63 = vpop.f32.mrf.mxu1  ;;  %v853_v0 = vpop.f32.mrf.mxu2 }
 0x184   : > { %1743 = vst [vmem:[%s2251_s15 + $0x8] sm:$0xff] %v1656_v61   ;;  %v854_v3 = vadd.f32 %v853_v0, %v758_v2  ;;  %v698_v10 = vadd.f32 %v697_v63, %v608_v62  ;;  %v764_v2 = vld [vmem:[%s2175_s11 + $0x50] sm:$0xff] }
 0x186   : > { %v927_v11 = vmax.f32 %v854_v3, 0.0 }
 0x18a   : > { %v610_v4 = vpop.f32.mrf.mxu0 }
 0x18b   : > { %v1729_v55 = vld [vmem:[%s2206_s28 + $0x10] sm:$0xff]   ;;  %v699_v7 = vpop.f32.mrf.mxu1  ;;  %v855_v8 = vpop.f32.mrf.mxu2 }
 0x18c   : > { %v1594_v5 = vunpack.c.l.bf16 %v1729_v55  ;;  %v1595_v9 = vunpack.c.h.bf16 %v1729_v55  ;;  %v700_v12 = vadd.f32 %v699_v7, %v610_v4  ;;  %v856_v6 = vadd.f32 %v855_v8, %v759_v1  ;;  %v780_v7 = vld [vmem:[%s2175_s11 + $0xd0] sm:$0xff] }
 0x18e   : > { %v928_v13 = vmax.f32 %v856_v6, 0.0  ;;  %v733_v14 = vpack.c.bf16 %v700_v12, %v698_v10  ;;  %v2267_v15 = vadd.f32 %v1594_v5, %v927_v11  ;;  %v765_v5 = vld [vmem:[%s2175_s11 + $0x58] sm:$0xff] }
 0x190   : > { %v2269_v16 = vadd.f32 %v1595_v9, %v928_v13  ;;  %897 = vmatmul.bf16.gmra.mxu2 %v733_v14 }
 0x192   : > { %v1661_v17 = vpack.c.bf16 %v2269_v16, %v2267_v15 }
 0x193   : > { %v858_v18 = vpop.f32.mrf.mxu2 }
 0x194   : > { %1744 = vst [vmem:[%s2251_s15 + $0x10] sm:$0xff] %v1661_v17   ;;  %v859_v20 = vadd.f32 %v858_v18, %v760_v19  ;;  %v781_v17 = vld [vmem:[%s2175_s11 + $0xd8] sm:$0xff] }
 0x196   : > { %v929_v21 = vmax.f32 %v859_v20, 0.0 }
 0x19b   : > { %v1730_v22 = vld [vmem:[%s2206_s28 + $0x18] sm:$0xff]   ;;  %v860_v24 = vpop.f32.mrf.mxu2 }
 0x19c   : > { %v1598_v25 = vunpack.c.l.bf16 %v1730_v22  ;;  %v861_v26 = vadd.f32 %v860_v24, %v761_v23  ;;  %v1599_v27 = vunpack.c.h.bf16 %v1730_v22 }
 0x19e   : > { %v930_v28 = vmax.f32 %v861_v26, 0.0  ;;  %v2277_v29 = vadd.f32 %v1598_v25, %v929_v21 }
 0x1a0   : > { %v2279_v30 = vadd.f32 %v1599_v27, %v930_v28 }
 0x1a2   : > { %v1666_v31 = vpack.c.bf16 %v2279_v30, %v2277_v29 }
 0x1a3   : > { %v863_v32 = vpop.f32.mrf.mxu2 }
 0x1a4   : > { %1745 = vst [vmem:[%s2251_s15 + $0x18] sm:$0xff] %v1666_v31   ;;  %v864_v34 = vadd.f32 %v863_v32, %v762_v33  ;;  %v766_v32 = vld [vmem:[%s2175_s11 + $0x60] sm:$0xff] }
 0x1a6   : > { %v931_v43 = vmax.f32 %v864_v34, 0.0 }
 0x1a8   : > { %v903_v35 = vpop.f32.mrf.mxu3 }
 0x1a9   : > { %v904_v47 = vadd.f32 %v903_v35, %v778_v41  ;;  %v782_v41 = vld [vmem:[%s2175_s11 + $0xe0] sm:$0xff] }
 0x1ab   : > { %v1731_v36 = vld [vmem:[%s2206_s28 + $0x20] sm:$0xff]   ;;  %v865_v42 = vpop.f32.mrf.mxu2  ;;  %v947_v56 = vmax.f32 %v904_v47, 0.0 }
 0x1ac   : > { %v1602_v44 = vunpack.c.l.bf16 %v1731_v36  ;;  %v866_v45 = vadd.f32 %v865_v42, %v763_v39  ;;  %v1603_v46 = vunpack.c.h.bf16 %v1731_v36  ;;  %v1739_v48 = vld [vmem:[%s2206_s28 + $0x60] sm:$0xff]   ;;  %v767_v39 = vld [vmem:[%s2175_s11 + $0x68] sm:$0xff] }
 0x1ad   : > { %v1634_v40 = vunpack.c.l.bf16 %v1739_v48  ;;  %v1635_v57 = vunpack.c.h.bf16 %v1739_v48 }
 0x1ae   : > { %v932_v49 = vmax.f32 %v866_v45, 0.0  ;;  %v2290_v52 = vadd.f32 %v1602_v44, %v931_v43 }
 0x1af   : > { %v2297_v63 = vadd.f32 %v1634_v40, %v947_v56 }
 0x1b0   : > { %v2292_v53 = vadd.f32 %v1603_v46, %v932_v49  ;;  %v905_v54 = vpop.f32.mrf.mxu3 }
 0x1b1   : > { %v906_v50 = vadd.f32 %v905_v54, %v779_v51  ;;  %v783_v51 = vld [vmem:[%s2175_s11 + $0xe8] sm:$0xff] }
 0x1b2   : > { %v1671_v58 = vpack.c.bf16 %v2292_v53, %v2290_v52 }
 0x1b3   : > { %v948_v61 = vmax.f32 %v906_v50, 0.0  ;;  %v868_v62 = vpop.f32.mrf.mxu2 }
 0x1b4   : > { %1746 = vst [vmem:[%s2251_s15 + $0x20] sm:$0xff] %v1671_v58   ;;  %v869_v55 = vadd.f32 %v868_v62, %v764_v2 }
 0x1b5   : > { %v2299_v0 = vadd.f32 %v1635_v57, %v948_v61 }
 0x1b6   : > { %v933_v9 = vmax.f32 %v869_v55, 0.0 }
 0x1b7   : > { %v1711_v3 = vpack.c.bf16 %v2299_v0, %v2297_v63 }
 0x1b8   : > { %v908_v1 = vpop.f32.mrf.mxu3 }
 0x1b9   : > { %1754 = vst [vmem:[%s2251_s15 + $0x60] sm:$0xff] %v1711_v3   ;;  %v909_v6 = vadd.f32 %v908_v1, %v780_v7 }
 0x1bb   : > { %v870_v8 = vpop.f32.mrf.mxu2  ;;  %v949_v22 = vmax.f32 %v909_v6, 0.0 }
 0x1bc   : > { %v871_v11 = vadd.f32 %v870_v8, %v765_v5 }
 0x1be   : > { %v934_v14 = vmax.f32 %v871_v11, 0.0  ;;  %v784_v11 = vld [vmem:[%s2175_s11 + $0xf0] sm:$0xff] }
 0x1c0   : > { %v1732_v4 = vld [vmem:[%s2206_s28 + $0x28] sm:$0xff]   ;;  %v910_v20 = vpop.f32.mrf.mxu3 }
 0x1c1   : > { %v1606_v10 = vunpack.c.l.bf16 %v1732_v4  ;;  %v1607_v12 = vunpack.c.h.bf16 %v1732_v4  ;;  %v1740_v13 = vld [vmem:[%s2206_s28 + $0x68] sm:$0xff]   ;;  %v911_v24 = vadd.f32 %v910_v20, %v781_v17  ;;  %v768_v4 = vld [vmem:[%s2175_s11 + $0x70] sm:$0xff] }
 0x1c2   : > { %v1638_v23 = vunpack.c.l.bf16 %v1740_v13  ;;  %v1639_v21 = vunpack.c.h.bf16 %v1740_v13 }
 0x1c3   : > { %v2310_v18 = vadd.f32 %v1606_v10, %v933_v9  ;;  %v2312_v19 = vadd.f32 %v1607_v12, %v934_v14  ;;  %v950_v26 = vmax.f32 %v911_v24, 0.0  ;;  %v873_v27 = vpop.f32.mrf.mxu2  ;;  %v769_v10 = vld [vmem:[%s2175_s11 + $0x78] sm:$0xff] }
 0x1c4   : > { %v2317_v28 = vadd.f32 %v1638_v23, %v949_v22  ;;  %v874_v34 = vadd.f32 %v873_v27, %v766_v32  ;;  %v785_v24 = vld [vmem:[%s2175_s11 + $0xf8] sm:$0xff] }
 0x1c5   : > { %v1676_v25 = vpack.c.bf16 %v2312_v19, %v2310_v18  ;;  %v2319_v31 = vadd.f32 %v1639_v21, %v950_v26 }
 0x1c6   : > { %v935_v43 = vmax.f32 %v874_v34, 0.0 }
 0x1c7   : > { %1747 = vst [vmem:[%s2251_s15 + $0x28] sm:$0xff] %v1676_v25   ;;  %v1716_v33 = vpack.c.bf16 %v2319_v31, %v2317_v28 }
 0x1c8   : > { %v913_v35 = vpop.f32.mrf.mxu3 }
 0x1c9   : > { %1755 = vst [vmem:[%s2251_s15 + $0x68] sm:$0xff] %v1716_v33   ;;  %v914_v47 = vadd.f32 %v913_v35, %v782_v41 }
 0x1cb   : > { %v875_v42 = vpop.f32.mrf.mxu2  ;;  %v951_v50 = vmax.f32 %v914_v47, 0.0  ;;  %v771_v47 = vld [vmem:[%s2175_s11 + $0x88] sm:$0xff] }
 0x1cc   : > { %v876_v45 = vadd.f32 %v875_v42, %v767_v39 }
 0x1ce   : > { %v936_v49 = vmax.f32 %v876_v45, 0.0 }
 0x1d0   : > { %v1733_v36 = vld [vmem:[%s2206_s28 + $0x30] sm:$0xff]   ;;  %v915_v40 = vpop.f32.mrf.mxu3 }
 0x1d1   : > { %v1610_v44 = vunpack.c.l.bf16 %v1733_v36  ;;  %v1611_v46 = vunpack.c.h.bf16 %v1733_v36  ;;  %v1741_v48 = vld [vmem:[%s2206_s28 + $0x70] sm:$0xff]   ;;  %v916_v58 = vadd.f32 %v915_v40, %v783_v51 }
 0x1d2   : > { %v1642_v57 = vunpack.c.l.bf16 %v1741_v48  ;;  %v1643_v61 = vunpack.c.h.bf16 %v1741_v48 }
 0x1d3   : > { %v2330_v54 = vadd.f32 %v1610_v44, %v935_v43  ;;  %v2332_v56 = vadd.f32 %v1611_v46, %v936_v49  ;;  %v952_v2 = vmax.f32 %v916_v58, 0.0  ;;  %v878_v3 = vpop.f32.mrf.mxu2  ;;  %v770_v43 = vld [vmem:[%s2175_s11 + $0x80] sm:$0xff] }
 0x1d4   : > { %v2337_v55 = vadd.f32 %v1642_v57, %v951_v50  ;;  %v879_v7 = vadd.f32 %v878_v3, %v768_v4  ;;  %v772_v3 = vld [vmem:[%s2175_s11 + $0x90] sm:$0xff] }
 0x1d5   : > { %v1681_v62 = vpack.c.bf16 %v2332_v56, %v2330_v54  ;;  %v2339_v1 = vadd.f32 %v1643_v61, %v952_v2 }
 0x1d6   : > { %v937_v6 = vmax.f32 %v879_v7, 0.0  ;;  %v773_v7 = vld [vmem:[%s2175_s11 + $0x98] sm:$0xff] }
 0x1d7   : > { %1748 = vst [vmem:[%s2251_s15 + $0x30] sm:$0xff] %v1681_v62   ;;  %v1721_v5 = vpack.c.bf16 %v2339_v1, %v2337_v55 }
 0x1d8   : > { %v918_v8 = vpop.f32.mrf.mxu3 }
 0x1d9   : > { %1756 = vst [vmem:[%s2251_s15 + $0x70] sm:$0xff] %v1721_v5   ;;  %v919_v20 = vadd.f32 %v918_v8, %v784_v11 }
 0x1db   : > { %v880_v12 = vpop.f32.mrf.mxu2  ;;  %v953_v27 = vmax.f32 %v919_v20, 0.0 }
 0x1dc   : > { %v881_v14 = vadd.f32 %v880_v12, %v769_v10 }
 0x1de   : > { %v938_v23 = vmax.f32 %v881_v14, 0.0 }
 0x1e0   : > { %v1734_v9 = vld [vmem:[%s2206_s28 + $0x38] sm:$0xff]   ;;  %v920_v26 = vpop.f32.mrf.mxu3 }
 0x1e1   : > { %v1614_v13 = vunpack.c.l.bf16 %v1734_v9  ;;  %v1615_v17 = vunpack.c.h.bf16 %v1734_v9  ;;  %v1742_v22 = vld [vmem:[%s2206_s28 + $0x78] sm:$0xff]   ;;  %v921_v33 = vadd.f32 %v920_v26, %v785_v24  ;;  %v775_v26 = vld [vmem:[%s2175_s11 + $0xa8] sm:$0xff] }
 0x1e2   : > { %v1646_v32 = vunpack.c.l.bf16 %v1742_v22  ;;  %v1647_v34 = vunpack.c.h.bf16 %v1742_v22  ;;  %v774_v22 = vld [vmem:[%s2175_s11 + $0xa0] sm:$0xff] }
 0x1e3   : > { %v2350_v21 = vadd.f32 %v1614_v13, %v937_v6  ;;  %v2352_v25 = vadd.f32 %v1615_v17, %v938_v23  ;;  %v954_v36 = vmax.f32 %v921_v33, 0.0  ;;  %v883_v39 = vpop.f32.mrf.mxu2 }
 0x1e4   : > { %v2357_v41 = vadd.f32 %v1646_v32, %v953_v27  ;;  %v884_v45 = vadd.f32 %v883_v39, %v770_v43 }
 0x1e5   : > { %v1686_v35 = vpack.c.bf16 %v2352_v25, %v2350_v21  ;;  %v2359_v42 = vadd.f32 %v1647_v34, %v954_v36 }
 0x1e6   : > { %v939_v49 = vmax.f32 %v884_v45, 0.0 }
 0x1e7   : > { %1749 = vst [vmem:[%s2251_s15 + $0x38] sm:$0xff] %v1686_v35   ;;  %v1726_v44 = vpack.c.bf16 %v2359_v42, %v2357_v41 }
 0x1e9   : > { %1757 = vst [vmem:[%s2251_s15 + $0x78] sm:$0xff] %v1726_v44  }
 0x1eb   : > { %v885_v48 = vpop.f32.mrf.mxu2 }
 0x1ec   : > { %v886_v40 = vadd.f32 %v885_v48, %v771_v47 }
 0x1ee   : > { %v940_v57 = vmax.f32 %v886_v40, 0.0 }
 0x1f0   : > { %v1735_v46 = vld [vmem:[%s2206_s28 + $0x40] sm:$0xff]  }
 0x1f1   : > { %v1618_v51 = vunpack.c.l.bf16 %v1735_v46  ;;  %v1619_v50 = vunpack.c.h.bf16 %v1735_v46  ;;  %v776_v46 = vld [vmem:[%s2175_s11 + $0xb0] sm:$0xff] }
 0x1f3   : > { %v2367_v58 = vadd.f32 %v1618_v51, %v939_v49  ;;  %v2369_v61 = vadd.f32 %v1619_v50, %v940_v57  ;;  %v888_v2 = vpop.f32.mrf.mxu2  ;;  %v777_v49 = vld [vmem:[%s2175_s11 + $0xb8] sm:$0xff]  ;;  %s1167_s11 = sshll.u32 (!%p1518_p13), %s2065_s18, 4  ;;  %s1168_s11 = int_to_ptr.vmem [resolvable:$true] %s1167_s11 }
 0x1f4   : > { %v889_v4 = vadd.f32 %v888_v2, %v772_v3 }
 0x1f5   : > { %v1691_v62 = vpack.c.bf16 %v2369_v61, %v2367_v58 }
 0x1f6   : > { %v941_v9 = vmax.f32 %v889_v4, 0.0 }
 0x1f7   : > { %1750 = vst [vmem:[%s2251_s15 + $0x40] sm:$0xff] %v1691_v62  }
 0x1fb   : > { %v890_v8 = vpop.f32.mrf.mxu2 }
 0x1fc   : > { %v891_v11 = vadd.f32 %v890_v8, %v773_v7 }
 0x1fe   : > { %v1736_v5 = vld [vmem:[%s2206_s28 + $0x48] sm:$0xff]   ;;  %v942_v6 = vmax.f32 %v891_v11, 0.0 }
 0x1ff   : > { %v1622_v10 = vunpack.c.l.bf16 %v1736_v5  ;;  %v1623_v12 = vunpack.c.h.bf16 %v1736_v5 }
 0x201   : > { %v1040_v13 = vadd.f32 %v1622_v10, %v941_v9  ;;  %v1041_v14 = vadd.f32 %v1623_v12, %v942_v6 }
 0x203   : > { %v1696_v17 = vpack.c.bf16 %v1041_v14, %v1040_v13  ;;  %v893_v20 = vpop.f32.mrf.mxu2 }
 0x204   : > { %v894_v23 = vadd.f32 %v893_v20, %v774_v22 }
 0x205   : > { %1751 = vst [vmem:[%s2251_s15 + $0x48] sm:$0xff] %v1696_v17  }
 0x206   : > { %v943_v32 = vmax.f32 %v894_v23, 0.0 }
 0x20b   : > { %v895_v27 = vpop.f32.mrf.mxu2 }
 0x20c   : > { %v1737_v24 = vld [vmem:[%s2206_s28 + $0x50] sm:$0xff]   ;;  %v896_v34 = vadd.f32 %v895_v27, %v775_v26 }
 0x20d   : > { %v1626_v33 = vunpack.c.l.bf16 %v1737_v24  ;;  %v1627_v35 = vunpack.c.h.bf16 %v1737_v24 }
 0x20e   : > { %v944_v36 = vmax.f32 %v896_v34, 0.0 }
 0x20f   : > { %v1042_v39 = vadd.f32 %v1626_v33, %v943_v32 }
 0x210   : > { %v1043_v43 = vadd.f32 %v1627_v35, %v944_v36 }
 0x212   : > { %v1701_v44 = vpack.c.bf16 %v1043_v43, %v1042_v39 }
 0x213   : > { %v898_v45 = vpop.f32.mrf.mxu2 }
 0x214   : > { %1752 = vst [vmem:[%s2251_s15 + $0x50] sm:$0xff] %v1701_v44   ;;  %v899_v47 = vadd.f32 %v898_v45, %v776_v46 }
 0x216   : > { %v945_v40 = vmax.f32 %v899_v47, 0.0 }
 0x21b   : > { %v1738_v48 = vld [vmem:[%s2206_s28 + $0x58] sm:$0xff]   ;;  %v900_v51 = vpop.f32.mrf.mxu2 }
 0x21c   : > { %v1630_v50 = vunpack.c.l.bf16 %v1738_v48  ;;  %v901_v57 = vadd.f32 %v900_v51, %v777_v49  ;;  %v1631_v62 = vunpack.c.h.bf16 %v1738_v48 }
 0x21e   : > { %v946_v2 = vmax.f32 %v901_v57, 0.0  ;;  %v1044_v3 = vadd.f32 %v1630_v50, %v945_v40 }
 0x220   : > { %v1045_v4 = vadd.f32 %v1631_v62, %v946_v2  ;;  %1125 = sbr.rel (%p1518_p13) target bundleno = 584 (0x248), region = 52 }
 0x222   : > { %v1706_v5 = vpack.c.bf16 %v1045_v4, %v1044_v3 }
 0x224   : > { %1753 = vst [vmem:[%s2251_s15 + $0x58] sm:$0xff] %v1706_v5  }
 0x225   : > { %1126 = vst [vmem:[#allocation4] sm:$0xff] %v2245_v37 }
 0x226   : > { %1127 = vst [vmem:[#allocation4 + $0x8] sm:$0xff] %v2247_v38 }
 0x227   : > { %1128 = vst [vmem:[#allocation4 + $0x10] sm:$0xff] %v2257_v59 }
 0x228   : > { %1129 = vst [vmem:[#allocation4 + $0x18] sm:$0xff] %v2259_v60 }
 0x229   : > { %1130 = vst [vmem:[#allocation4 + $0x20] sm:$0xff] %v2267_v15 }
 0x22a   : > { %1131 = vst [vmem:[#allocation4 + $0x28] sm:$0xff] %v2269_v16 }
 0x22b   : > { %1132 = vst [vmem:[#allocation4 + $0x30] sm:$0xff] %v2277_v29 }
 0x22c   : > { %1133 = vst [vmem:[#allocation4 + $0x38] sm:$0xff] %v2279_v30 }
 0x22d   : > { %1134 = vst [vmem:[#allocation4 + $0x40] sm:$0xff] %v2290_v52 }
 0x22e   : > { %1135 = vst [vmem:[#allocation4 + $0x48] sm:$0xff] %v2292_v53 }
 0x22f   : > { %1136 = vst [vmem:[#allocation4 + $0x50] sm:$0xff] %v2310_v18 }
 0x230   : > { %1137 = vst [vmem:[#allocation4 + $0x58] sm:$0xff] %v2312_v19 }
 0x231   : > { %1138 = vst [vmem:[#allocation4 + $0x60] sm:$0xff] %v2330_v54 }
 0x232   : > { %1139 = vst [vmem:[#allocation4 + $0x68] sm:$0xff] %v2332_v56 }
 0x233   : > { %1140 = vst [vmem:[#allocation4 + $0x70] sm:$0xff] %v2350_v21 }
 0x234   : > { %1141 = vst [vmem:[#allocation4 + $0x78] sm:$0xff] %v2352_v25 }
 0x235   : > { %1142 = vst [vmem:[#allocation4 + $0x80] sm:$0xff] %v2367_v58 }
 0x236   : > { %1143 = vst [vmem:[#allocation4 + $0x88] sm:$0xff] %v2369_v61 }
 0x237   : > { %1144 = vst [vmem:[#allocation4 + $0x90] sm:$0xff] %v1040_v13 }
 0x238   : > { %1145 = vst [vmem:[#allocation4 + $0x98] sm:$0xff] %v1041_v14 }
 0x239   : > { %1146 = vst [vmem:[#allocation4 + $0xa0] sm:$0xff] %v1042_v39 }
 0x23a   : > { %1147 = vst [vmem:[#allocation4 + $0xa8] sm:$0xff] %v1043_v43 }
 0x23b   : > { %1148 = vst [vmem:[#allocation4 + $0xb0] sm:$0xff] %v1044_v3 }
 0x23c   : > { %1149 = vst [vmem:[#allocation4 + $0xb8] sm:$0xff] %v1045_v4 }
 0x23d   : > { %1150 = vst [vmem:[#allocation4 + $0xc0] sm:$0xff] %v2297_v63 }
 0x23e   : > { %1151 = vst [vmem:[#allocation4 + $0xc8] sm:$0xff] %v2299_v0 }
 0x23f   : > { %1152 = vst [vmem:[#allocation4 + $0xd0] sm:$0xff] %v2317_v28 }
 0x240   : > { %1153 = vst [vmem:[#allocation4 + $0xd8] sm:$0xff] %v2319_v31 }
 0x241   : > { %1154 = vst [vmem:[#allocation4 + $0xe0] sm:$0xff] %v2337_v55 }
 0x242   : > { %1155 = vst [vmem:[#allocation4 + $0xe8] sm:$0xff] %v2339_v1 }
 0x243   : > { %1156 = vst [vmem:[#allocation4 + $0xf0] sm:$0xff] %v2357_v41 }
 0x244   : > { %1157 = vst [vmem:[#allocation4 + $0xf8] sm:$0xff] %v2359_v42 }
 0x245   : > { %1172 = dma.vmem_to_hbm [thread:$0]  %s1168_s11, 4096, %s1170_s25, [#allocation5 + $0x2] }
 0x246   : > { %2033 = dma.done.wait [#allocation5 + $0x2], 4096 }
 0x247   : > { %2034 = vsyncadd [#allocation5 + $0x2], 4294963200 }
 0x248 PF: > { %s20_s20 = sadd.s32 1, %s2057_s20   ;;  %s2442_s15 = smov %s2041_s16 }
 0x249   : > { %p17_p0 = scmp.ge.s32.totalorder %s20_s20, 4   ;;  %s2443_s16 = smov %s2045_s17 }
 0x24a   : > { %s2444_s17 = smov %s2140_s27  ;;  %s2445_s18 = smov %s2053_s19 }
 0x24b   : > { %s2446_s19 = smov %s2448_s22  ;;  %19 = sbr.rel (!%p17_p0) target bundleno = 6 (0x6), region = 94 }
 0x250   :  { %1176 = vsyncpa [#allocation7], 1 }
 0x251   :  { %1178 = vsyncpa [#allocation7 + $0x1], 1 }
 0x252   :  { %1179 = vsyncpa [#allocation9], 1 }
 0x253   :  { %1181 = vsyncpa [#allocation9 + $0x1], 1 }
 0x254   :  { %1182 = vsyncmov [#allocation5] }
 0x257   :  { %s1183_s29 = vpop.sfrf %1182 }
 0x258   :  { %p1519_p1 = scmp.ne.s32.totalorder %s1183_s29, 0 }
 0x25a   :  { %1187 = shalt.err (%p1519_p1)  }
 0x25b   :  { %1189 = vsyncmov [#allocation5 + $0x1] }
 0x25e   :  { %s1190_s30 = vpop.sfrf %1189 }
 0x25f   :  { %p1520_p2 = scmp.ne.s32.totalorder %s1190_s30, 0 }
 0x261   :  { %1194 = shalt.err (%p1520_p2)  }
 0x262   :  { %1196 = vsyncmov [#allocation5 + $0x2] }
 0x265   :  { %s1197_s27 = vpop.sfrf %1196 }
 0x266   :  { %p1521_p3 = scmp.ne.s32.totalorder %s1197_s27, 0 }
 0x268   :  { %1201 = shalt.err (%p1521_p3)  }

</bundles_post_ra>
